<compile_context>
chip_gen: v5e
topology: v5e:2x2
jax: 0.10.0
libtpu: 0.0.40
codegen_flags: <defaults>
</compile_context>

<pallas_src>
import functools

import jax
import jax.numpy as jnp
from jax.experimental import pallas as pl
from jax.experimental.pallas import tpu as pltpu

_ROW_GROUP = 64          # channels per in-register partial sum (8 f32 vregs)
_DEFAULT_TL_CAP = 2048   # max L columns per block (keeps chunk unroll <= 16)


def _int_pow(x, n):
    """x**n for a static positive integer n using only VPU multiplies."""
    result = None
    base = x
    while n:
        if n & 1:
            result = base if result is None else result * base
        n >>= 1
        if n:
            base = base * base
    return result


def _pow_chunk(xc, p, int_p, eps):
    """clamp(x, eps) ** p for one <=128-lane chunk, computed in f32."""
    xc = xc.astype(jnp.float32)
    xc = jnp.maximum(xc, eps)                     # clamp(min=eps)
    if int_p is not None:
        return _int_pow(xc, int_p)                # VPU multiplies only
    return jnp.exp(p * jnp.log(xc))               # x >= eps > 0


def _rowgroup_partials(x_ref, c0, rg, valid_cols, p, int_p, eps):
    """Powered partial sums for rows [c0, c0+rg) over the first valid_cols.

    Returns (partial_128, tail_chunk, tail_width):
      partial_128: (1, rg, 128) register-resident sum over all full 128-lane
                   chunks (None if valid_cols < 128).
      tail_chunk : (1, rg, tail_width) powered ragged tail (None if aligned).
    Only the first `valid_cols` columns are ever read, so partial L blocks
    need no iota/where masking and never touch stale VMEM.
    """
    n_full = valid_cols // 128
    tail = valid_cols % 128
    partial = None
    for ci in range(n_full):
        j = ci * 128
        xp = _pow_chunk(x_ref[:, c0:c0 + rg, j:j + 128], p, int_p, eps)
        partial = xp if partial is None else partial + xp
    tail_chunk = None
    if tail:
        j = n_full * 128
        tail_chunk = _pow_chunk(x_ref[:, c0:c0 + rg, j:j + tail], p, int_p, eps)
    return partial, tail_chunk, tail


def _gem_kernel_single(x_ref, o_ref, *, p, int_p, eps, inv_l, valid_cols):
    """num_l == 1: whole L in one block, no VMEM accumulator needed."""
    tc = x_ref.shape[1]
    inv_p = 1.0 / p
    for c0 in range(0, tc, _ROW_GROUP):
        rg = min(_ROW_GROUP, tc - c0)
        partial, tail_chunk, _ = _rowgroup_partials(
            x_ref, c0, rg, valid_cols, p, int_p, eps)
        s = None
        if partial is not None:
            s = jnp.sum(partial, axis=-1, keepdims=True)
        if tail_chunk is not None:
            st = jnp.sum(tail_chunk, axis=-1, keepdims=True)
            s = st if s is None else s + st
        s = s * inv_l
        res = s if p == 1.0 else jnp.power(s, inv_p)
        o_ref[:, c0:c0 + rg, :] = res.astype(o_ref.dtype)


def _gem_kernel_multi(x_ref, o_ref, acc_ref, *, p, int_p, eps, inv_l,
                      last_valid):
    """num_l > 1: accumulate x^p sums in a (1, tc, 128) f32 VMEM scratch."""
    l = pl.program_id(2)
    nl = pl.num_programs(2)
    tc = x_ref.shape[1]
    tl = x_ref.shape[2]

    @pl.when(l == 0)
    def _():
        acc_ref[...] = jnp.zeros_like(acc_ref)

    def accumulate(valid_cols):
        for c0 in range(0, tc, _ROW_GROUP):
            rg = min(_ROW_GROUP, tc - c0)
            partial, tail_chunk, tail = _rowgroup_partials(
                x_ref, c0, rg, valid_cols, p, int_p, eps)
            if partial is not None:
                acc_ref[:, c0:c0 + rg, :] += partial     # one RMW per step
            if tail_chunk is not None:
                acc_ref[:, c0:c0 + rg, :tail] += tail_chunk

    if last_valid == tl:
        accumulate(tl)
    else:
        is_last = l == nl - 1

        @pl.when(is_last)
        def _():
            accumulate(last_valid)        # static slice, no masking ops

        @pl.when(jnp.logical_not(is_last))
        def _():
            accumulate(tl)

    @pl.when(l == nl - 1)
    def _():
        s = jnp.sum(acc_ref[...], axis=-1, keepdims=True) * inv_l
        res = s if p == 1.0 else jnp.power(s, 1.0 / p)
        o_ref[...] = res.astype(o_ref.dtype)


def _choose_tiles(B, C, L, itemsize, block_target_bytes, tl_cap):
    """Pick (TC, TL): cap TL, spend the remaining byte budget on channels."""
    tl_cap = max(128, (tl_cap // 128) * 128)
    tl = L if L <= tl_cap else tl_cap             # tl is L or a 128-multiple
    tc = block_target_bytes // max(tl * itemsize, 1)
    tc = max(8, (tc // 8) * 8)
    if tc >= C:
        tc = C                                    # whole C in one tile
        if B == 1 and C >= 16:
            # v7x megacore: keep >= 2 parallel blocks so both TCs get work.
            tc = min(C, (((C + 1) // 2) + 7) // 8 * 8)
    return tc, tl


def generalized_mean_pooling(x, norm=3.0, output_size=1, eps=1e-6,
                             block_target_bytes=4 * 1024 * 1024,
                             tl_cap=_DEFAULT_TL_CAP):
    """GeM pooling. x: (B, C, L) -> (B, C, 1)."""
    assert norm > 0
    # TODO(synk): only output_size=1 (global GeM, as used in the ReID model) is
    # implemented; general adaptive bins would need a per-bin inner loop.
    assert output_size == 1, "kernel implements output_size=1"
    B, C, L = x.shape
    p = float(norm)
    int_p = int(p) if (p.is_integer() and 1 <= p <= 32) else None
    itemsize = jnp.dtype(x.dtype).itemsize

    tc, tl = _choose_tiles(B, C, L, itemsize, block_target_bytes, tl_cap)
    num_c = pl.cdiv(C, tc)
    num_l = pl.cdiv(L, tl)
    last_valid = L - (num_l - 1) * tl             # valid cols in last L block

    elems = B * C * L
    cost = pl.CostEstimate(
        flops=elems * ((int_p if int_p is not None else 2) + 2),
        transcendentals=(0 if int_p is not None else 2 * elems) + 2 * B * C,
        bytes_accessed=elems * itemsize + B * C * itemsize,
    )

    # Explicit scoped-VMEM limit only when large blocks need it (v5e default
    # 16 MiB scoped; v7x has 64 MiB physical).
    block_bytes = tc * tl * itemsize
    acc_bytes = tc * 128 * 4 if num_l > 1 else 0
    need = 2 * block_bytes + acc_bytes + (2 << 20)
    vmem_limit = None
    if need > 12 * 1024 * 1024:
        vmem_limit = int(min(need + (8 << 20), 96 * 1024 * 1024))

    if num_l == 1:
        kernel = functools.partial(
            _gem_kernel_single, p=p, int_p=int_p, eps=float(eps),
            inv_l=1.0 / L, valid_cols=L)
        grid_spec = pltpu.PrefetchScalarGridSpec(
            num_scalar_prefetch=0,
            grid=(B, num_c),
            in_specs=[pl.BlockSpec((1, tc, tl), lambda b, c: (b, c, 0))],
            out_specs=pl.BlockSpec((1, tc, 1), lambda b, c: (b, c, 0)),
            scratch_shapes=(),
        )
        dim_sem = ("parallel", "parallel")
    else:
        kernel = functools.partial(
            _gem_kernel_multi, p=p, int_p=int_p, eps=float(eps),
            inv_l=1.0 / L, last_valid=last_valid)
        grid_spec = pltpu.PrefetchScalarGridSpec(
            num_scalar_prefetch=0,
            grid=(B, num_c, num_l),
            in_specs=[pl.BlockSpec((1, tc, tl), lambda b, c, l: (b, c, l))],
            out_specs=pl.BlockSpec((1, tc, 1), lambda b, c, l: (b, c, 0)),
            scratch_shapes=[pltpu.VMEM((1, tc, 128), jnp.float32)],
        )
        dim_sem = ("parallel", "parallel", "arbitrary")

    return pl.pallas_call(
        kernel,
        out_shape=jax.ShapeDtypeStruct((B, C, 1), x.dtype),
        grid_spec=grid_spec,
        compiler_params=pltpu.CompilerParams(
            dimension_semantics=dim_sem, vmem_limit_bytes=vmem_limit),
        cost_estimate=cost,
    )(x)


def _reference(x, norm=3.0, eps=1e-6):
    xf = jnp.maximum(x.astype(jnp.float32), eps)
    xp = jnp.power(xf, norm)
    m = jnp.mean(xp, axis=-1, keepdims=True)
    return jnp.power(m, 1.0 / norm).astype(x.dtype)


if __name__ == "__main__":
    key = jax.random.PRNGKey(0)
    ks = jax.random.split(key, 6)

    def check(x, out, norm, rtol=1e-4, atol=1e-5):
        ref = _reference(x, norm=norm, eps=1e-6)
        assert out.shape == ref.shape, (out.shape, ref.shape)
        diff = jnp.max(jnp.abs(out.astype(jnp.float32) - ref.astype(jnp.float32)))
        assert jnp.allclose(out.astype(jnp.float32), ref.astype(jnp.float32),
                            rtol=rtol, atol=atol), float(diff)

    # 1) single-L, 128-aligned block.
    x1 = jax.random.normal(ks[0], (2, 16, 128), dtype=jnp.float32)
    o1 = jax.block_until_ready(generalized_mean_pooling(x1))
    check(x1, o1, 3.0)

    # 2) single-L, ragged L tail (196 = 128 + 68) + C not a multiple of 8.
    x2 = jax.random.normal(ks[1], (2, 20, 196), dtype=jnp.float32)
    o2 = jax.block_until_ready(generalized_mean_pooling(x2))
    check(x2, o2, 3.0)

    # 3) multi-L with a partial last L block + B==1 megacore C split
    #    (tl_cap forced small to exercise the accumulator path).
    x3 = jax.random.normal(ks[2], (1, 32, 320), dtype=jnp.float32)
    o3 = jax.block_until_ready(generalized_mean_pooling(x3, tl_cap=128))
    check(x3, o3, 3.0)

    # 4) multi-L with partial C tiles (tiny block budget forces tc < C).
    x4 = jax.random.normal(ks[3], (2, 20, 256), dtype=jnp.float32)
    o4 = jax.block_until_ready(
        generalized_mean_pooling(x4, block_target_bytes=4096, tl_cap=128))
    check(x4, o4, 3.0)

    # 5) bf16 input, single-L ragged.
    x5 = jax.random.normal(ks[4], (2, 16, 200), dtype=jnp.bfloat16)
    o5 = jax.block_until_ready(generalized_mean_pooling(x5))
    check(x5, o5, 3.0, rtol=2e-2, atol=2e-2)

    # 6) non-integer norm (exp/log EUP path).
    x6 = jax.random.normal(ks[5], (2, 16, 128), dtype=jnp.float32)
    o6 = jax.block_until_ready(generalized_mean_pooling(x6, norm=2.5))
    check(x6, o6, 2.5, rtol=1e-3, atol=1e-5)

    print("KERNEL_OK")
</pallas_src>

<mosaic_0001>
module attributes {stable_mosaic.version = 11 : i64} {
  func.func @_gem_kernel_single(%arg0: i32, %arg1: i32, %arg2: memref<1x16x128xf32, #tpu.memory_space<vmem>>, %arg3: memref<1x16x1xf32, #tpu.memory_space<vmem>>) attributes {dimension_semantics = [#tpu.dimension_semantics<parallel>, #tpu.dimension_semantics<parallel>], iteration_bounds = array<i64: 2, 1>, scalar_prefetch = 0 : i64, scratch_operands = 0 : i64, tpu.core_type = #tpu.core_type<tc>, window_params = [{transform_indices = @transform_0, window_bounds = array<i64: 1, 16, 128>}, {transform_indices = @transform_1, window_bounds = array<i64: 1, 16, 1>}]} {
    %c0 = arith.constant 0 : index
    %c0_0 = arith.constant 0 : index
    %c0_1 = arith.constant 0 : index
    %0 = vector.load %arg2[%c0, %c0_0, %c0_1] : memref<1x16x128xf32, #tpu.memory_space<vmem>>, vector<1x16x128xf32>
    %cst = arith.constant 9.99999997E-7 : f32
    %1 = vector.broadcast %cst : f32 to vector<1x16x128xf32>
    %2 = arith.maximumf %0, %1 : vector<1x16x128xf32>
    %3 = arith.mulf %2, %2 : vector<1x16x128xf32>
    %4 = arith.mulf %2, %3 : vector<1x16x128xf32>
    %cst_2 = arith.constant dense<0.000000e+00> : vector<1x16xf32>
    %5 = vector.multi_reduction <add>, %4, %cst_2 [2] : vector<1x16x128xf32> to vector<1x16xf32>
    %6 = vector.shape_cast %5 : vector<1x16xf32> to vector<1x16x1xf32>
    %cst_3 = arith.constant 7.812500e-03 : f32
    %7 = vector.broadcast %cst_3 : f32 to vector<1x16x1xf32>
    %8 = arith.mulf %6, %7 : vector<1x16x1xf32>
    %cst_4 = arith.constant 0.333333343 : f32
    %9 = vector.broadcast %cst_4 : f32 to vector<1x16x1xf32>
    %10 = math.powf %8, %9 : vector<1x16x1xf32>
    %c0_5 = arith.constant 0 : index
    %c0_6 = arith.constant 0 : index
    %c0_7 = arith.constant 0 : index
    %11 = vector.load %arg3[%c0_5, %c0_6, %c0_7] : memref<1x16x1xf32, #tpu.memory_space<vmem>>, vector<1x16x1xf32>
    tpu.vector_store %arg3[%c0_5, %c0_6, %c0_7], %10 {strides = array<i32>} : memref<1x16x1xf32, #tpu.memory_space<vmem>>, vector<1x16x1xf32>,
    return
  }
  func.func @transform_0(%arg0: i32, %arg1: i32) -> (i32, i32, i32) {
    %c0_i32 = arith.constant 0 : i32
    %c0_i32_0 = arith.constant 0 : i32
    return %arg0, %arg1, %c0_i32 : i32, i32, i32
  }
  func.func @transform_1(%arg0: i32, %arg1: i32) -> (i32, i32, i32) {
    %c0_i32 = arith.constant 0 : i32
    %c0_i32_0 = arith.constant 0 : i32
    return %arg0, %arg1, %c0_i32 : i32, i32, i32
  }
}

</mosaic_0001>

<bundles_post_ra>
// kernel: tpu_custom_call.1
= control target key start
LH: loop header
LB: loop body
LE: loop exit
PB: predicated region body
PF: predicated region fallthrough
CT: control target
= control target key end

     0   :  { %6 = vsyncpa [#allocation3], 0  ;;  %s593_s0 = inlined_call_operand.hbm [shape: f32[2,16,128], index: 0, kind: input, shape index: {}]   ;;  %s594_s1 = inlined_call_operand.vmem [shape: f32[2,16,1], index: 1, kind: output, shape index: {}]  }
   0x1   :  { %8 = vsyncpa [#allocation3 + $0x1], 0  ;;  %s503_s6 = smov 0   ;;  %s505_s7 = smov 0  }
   0x2   :  { %s507_s8 = smov 0   ;;  %s509_s9 = smov 0  }
   0x3   :  { %s511_s10 = smov 0   ;;  %s513_s11 = smov 0  }
   0x4 LB: > { %s281_s12 = sadd.s32 4294967295, %s489_s11   ;;  %s26_s13 = sadd.s32 1, %s485_s10  ;;  %s489_s11 = sphi %s513_s11, %s14_s11   ;;  %s485_s10 = sphi %s511_s10, %s601_s10   ;;  %s481_s9 = sphi %s509_s9, %s600_s9   ;;  %s477_s8 = sphi %s507_s8, %s599_s8   ;;  %s473_s7 = sphi %s505_s7, %s598_s7   ;;  %s469_s6 = sphi %s503_s6, %s597_s6  }
   0x5   : > { %p28_p0 = scmp.ge.s32.totalorder %s26_s13, 2  ;;  %s35_s14 = sadd.s32 1, %s477_s8 }
   0x6   : > { %p42_p1 = scmp.ne.s32.totalorder %s477_s8, %s473_s7  ;;  %p43_p2 = scmp.eq.s32.totalorder %s489_s11, 0 }
   0x7   : > { %s603_s13 = smov (%p28_p0, %s26_s13), 0  ;;  %p48_p4 = scmp.ne.s32.totalorder %s473_s7, %s469_s6 }
   0x8   : > { %p539_p3 = por %p43_p2, %p42_p1  ;;  %s30_s16 = ssub.s32 %s485_s10, %s603_s13 }
   0x9   : > { %p49_p5 = scmp.eq.s32.totalorder %s281_s12, 0  ;;  %p33_p6 = scmp.eq.s32.totalorder %s30_s16, 0 }
   0xa   : > { %p350_p8 = scmp.lt.s32.totalorder %s489_s11, 2  ;;  %s100_s19 = sand.u32 1, %s477_s8  }
   0xb   : > { %p546_p7 = por %p49_p5, %p48_p4  ;;  %s294_s20 = sshll.u32 %s485_s10, 4 }
   0xc   : > { %s552_s18 = scalar_select %p33_p6, %s477_s8, %s35_s14  }
   0xd   : > { %s285_s21 = sshll.u32 %s100_s19, 4  ;;  %s111_s24 = scalar_lea.hbm %s593_s0, %s294_s20 }
   0xe   : > { %s112_s25 = sshll.u32 %s111_s24, 4  ;;  %s104_s26 = scalar_lea.vmem [#allocation2], %s285_s21  ;;  %s113_s25 = int_to_ptr.hbm [resolvable:$true] %s112_s25 }
   0xf   : > { %s114_s27 = sshll.u32 %s104_s26, 4  ;;  %p347_p9 = pnand %p350_p8, %p539_p3  ;;  %s115_s27 = int_to_ptr.vmem [resolvable:$true] %s114_s27 }
  0x10   : > { %p288_p10 = scmp.ge.s32.totalorder %s489_s11, 1  ;;  %p122_p11 = scmp.lt.s32.totalorder %s489_s11, 3 }
  0x11   : > { %s101_s28 = scalar_lea.sflag [#allocation3], %s100_s19  ;;  %s491_s29 = smov 128  }
  0x12   : > { %s492_s30 = smov 8   ;;  %p123_p12 = pnand %p288_p10, %p122_p11 }
  0x13   : > { %349 = dma.hbm_to_vmem [thread:$0]  (!%p347_p9), %s113_s25, 256, %s115_s27, %s101_s28, %s491_s29, %s491_s29, %s492_s30  }
  0x14   : > { %126 = sbr.rel (%p123_p12) target bundleno = 199 (0xc7), region = 24  ;;  %s128_s2 = sand.u32 (!%p123_p12), 1, %s473_s7  }
  0x15   : > { %s289_s3 = sshll.u32 (!%p123_p12), %s128_s2, 4  ;;  %s129_s4 = scalar_lea.sflag (!%p123_p12), [#allocation3], %s128_s2 }
  0x16   : > { %s132_s5 = scalar_lea.vmem (!%p123_p12), [#allocation2], %s289_s3 }
  0x19   : > { %464 = dma.done.wait (%p546_p7), %s129_s4, 256  }
  0x1a   : > { %466 = vsyncadd (%p546_p7), %s129_s4, 4294967040  ;;  %v167_v0 = vld [vmem:[%s132_s5] sm:$0xff]  ;;  %v168_v1 = vld [vmem:[%s132_s5 + $0x8] sm:$0xff]  ;;  %p158_p13 = scmp.lt.s32.totalorder %s481_s9, 1  ;;  %vm183_vm3 = vcmask 7168  }
  0x1b   : > { %v169_v2 = vmax.f32 %v167_v0, 1e-06  ;;  %v170_v4 = vmax.f32 %v168_v1, 1e-06 }
  0x1c   : > { %s605_s9 = smov (!%p158_p13, %s481_s9), 1 }
  0x1d   : > { %v171_v3 = vmul.f32 %v169_v2, %v169_v2  ;;  %v172_v6 = vmul.f32 %v170_v4, %v170_v4  ;;  %s295_s6 = sshll.u32 %s605_s9, 4 }
  0x1e   : > { %s165_s15 = scalar_lea.vmem %s594_s1, %s295_s6 }
  0x1f   : > { %v173_v5 = vmul.f32 %v171_v3, %v169_v2  ;;  %v174_v7 = vmul.f32 %v172_v6, %v170_v4 }
  0x21   : > { %175 = vadd.xlane.f32.xlu0 %v173_v5 }
  0x29   : > { %177 = vadd.xlane.f32.xlu0 %v174_v7 }
  0x94   : > { %v176_v8 = vpop.xlane.xlu0 %175 }
  0x95   : > { %v179_v9 = vmul.f32 0.0078125, %v176_v8 }
  0x97   : > { %v298_v10 = vand.u32 2147483647, %v179_v9  ;;  %v315_v32 = vand.u32 2147483648, %v179_v9  ;;  %vm297_vm2 = vcmp.lt.f32.partialorder %v179_v9, 0.0  ;;  %vm296_vm4 = vcmp.eq.f32.partialorder %v179_v9, 0.0 }
  0x99   : > { %401 = vlog2.f32 %v298_v10  ;;  %vm312_vm0 = vweird.f32 %v298_v10  ;;  %vm314_vm1 = vcmp.eq.f32.partialorder %v298_v10, 0.0  ;;  %vm299_vm5 = vcmp.eq.f32.partialorder %v298_v10, inf }
  0x9c   : > { %v178_v11 = vpop.xlane.xlu0 %177 }
  0x9d   : > { %v180_v12 = vmul.f32 0.0078125, %v178_v11 }
  0x9f   : > { %v402_v13 = vpop.eup %401  ;;  %v322_v14 = vand.u32 2147483647, %v180_v12  ;;  %v339_v42 = vand.u32 2147483648, %v180_v12  ;;  %vm321_vm8 = vcmp.lt.f32.partialorder %v180_v12, 0.0  ;;  %vm320_vm9 = vcmp.eq.f32.partialorder %v180_v12, 0.0 }
  0xa0   : > { %v302_v15 = vmul.f32 -0.33333334, %v402_v13 }
  0xa1   : > { %403 = vlog2.f32 %v322_v14  ;;  %vm336_vm6 = vweird.f32 %v322_v14  ;;  %vm338_vm7 = vcmp.eq.f32.partialorder %v322_v14, 0.0  ;;  %vm323_vm10 = vcmp.eq.f32.partialorder %v322_v14, inf }
  0xa2   : > { %405 = vpow2.f32 %v302_v15 }
  0xa7   : > { %v404_v16 = vpop.eup %403 }
  0xa8   : > { %v406_v17 = vpop.eup %405  ;;  %v326_v18 = vmul.f32 -0.33333334, %v404_v16 }
  0xa9   : > { %v304_v19 = vmul.f32 %v406_v17, %v406_v17 }
  0xaa   : > { %407 = vpow2.f32 %v326_v18 }
  0xab   : > { %v305_v20 = vmul.f32 %v304_v19, %v298_v10 }
  0xad   : > { %v306_v21 = vmul.f32 %v305_v20, %v304_v19 }
  0xaf   : > { %v307_v22 = vsub.f32 %v306_v21, %v406_v17 }
  0xb0   : > { %v408_v23 = vpop.eup %407 }
  0xb1   : > { %v308_v24 = vmul.f32 -0.33333334, %v307_v22  ;;  %v328_v25 = vmul.f32 %v408_v23, %v408_v23 }
  0xb3   : > { %v309_v26 = vadd.f32 %v406_v17, %v308_v24  ;;  %v329_v27 = vmul.f32 %v328_v25, %v322_v14 }
  0xb5   : > { %v310_v28 = vmul.f32 %v309_v26, %v179_v9  ;;  %v330_v29 = vmul.f32 %v329_v27, %v328_v25 }
  0xb7   : > { %v311_v30 = vmul.f32 %v310_v28, %v309_v26  ;;  %v331_v31 = vsub.f32 %v330_v29, %v408_v23 }
  0xb9   : > { %v313_v33 = vsel %vm312_vm0, %v179_v9, %v311_v30  ;;  %v332_v34 = vmul.f32 -0.33333334, %v331_v31 }
  0xba   : > { %v316_v35 = vsel %vm314_vm1, %v315_v32, %v313_v33 }
  0xbb   : > { %v317_v36 = vsel %vm297_vm2, nan, %v316_v35  ;;  %v333_v37 = vadd.f32 %v408_v23, %v332_v34 }
  0xbc   : > { %v318_v38 = vsel %vm296_vm4, 0.0, %v317_v36 }
  0xbd   : > { %v319_v39 = vsel %vm299_vm5, inf, %v318_v38  ;;  %v334_v40 = vmul.f32 %v333_v37, %v180_v12 }
  0xbe   : > { %184 = vst.msk [vmem:[%s165_s15] sm:$0xff] %vm183_vm3, %v319_v39 }
  0xbf   : > { %v335_v41 = vmul.f32 %v334_v40, %v333_v37 }
  0xc1   : > { %v337_v43 = vsel %vm336_vm6, %v180_v12, %v335_v41 }
  0xc2   : > { %v340_v44 = vsel %vm338_vm7, %v339_v42, %v337_v43 }
  0xc3   : > { %v341_v45 = vsel %vm321_vm8, nan, %v340_v44 }
  0xc4   : > { %v342_v46 = vsel %vm320_vm9, 0.0, %v341_v45 }
  0xc5   : > { %v343_v47 = vsel %vm323_vm10, inf, %v342_v46 }
  0xc6   : > { %185 = vst.msk [vmem:[%s165_s15 + $0x8] sm:$0xff] %vm183_vm3, %v343_v47 }
  0xc7 PF: > { %s14_s11 = sadd.s32 1, %s489_s11   ;;  %s597_s6 = smov %s473_s7 }
  0xc8   : > { %p11_p0 = scmp.ge.s32.totalorder %s14_s11, 4   ;;  %s598_s7 = smov %s477_s8 }
  0xc9   : > { %s599_s8 = smov %s552_s18  ;;  %s600_s9 = smov %s485_s10 }
  0xca   : > { %s601_s10 = smov %s603_s13  ;;  %13 = sbr.rel (!%p11_p0) target bundleno = 4 (0x4), region = 64 }
  0xcf   :  { %216 = vsyncpa [#allocation3], 1 }
  0xd0   :  { %218 = vsyncpa [#allocation3 + $0x1], 1 }

</bundles_post_ra>
